<compile_context>
chip_gen: v7x
topology: tpu7x:2x2x1
jax: 0.10.0
libtpu: 0.0.40
codegen_flags: <defaults>
</compile_context>

<pallas_src>
import math

import jax
import jax.numpy as jnp
from jax.experimental import pallas as pl
from jax.experimental.pallas import tpu as pltpu


def _round_up(v, m):
    return (v + m - 1) // m * m


def _agg_then_linear_kernel(adj_ref, x_ref, wt_ref, b_ref, o_ref, acc_ref):
    # Grid: (B, N/TM, N/TK).  adj_ref: (TM, TK), x_ref: (TK, F_in),
    # wt_ref: (F_in, F_out_p) resident, b_ref: (1, F_out_p) resident,
    # o_ref: (TM, F_out_p), acc_ref: (TM, F_in) f32 accumulator for adj @ x.
    k = pl.program_id(2)

    @pl.when(k == 0)
    def _():
        acc_ref[...] = jnp.zeros_like(acc_ref)

    acc_ref[...] += jnp.dot(adj_ref[...], x_ref[...],
                            preferred_element_type=jnp.float32)

    @pl.when(k == pl.num_programs(2) - 1)
    def _():
        # Feed the MXU in the input dtype (bf16-native on v6e/v7x), keep f32 acc.
        agg = acc_ref[...].astype(x_ref.dtype)
        out = jnp.dot(agg, wt_ref[...], preferred_element_type=jnp.float32)
        o_ref[...] = (out + b_ref[...]).astype(o_ref.dtype)


def _agg_only_kernel(adj_ref, h_ref, b_ref, o_ref, acc_ref):
    # h already carries W^T (cheaper association when F_out < F_in):
    # out = adj @ h + b.  acc_ref: (TM, F_out_p) f32.
    k = pl.program_id(2)

    @pl.when(k == 0)
    def _():
        acc_ref[...] = jnp.zeros_like(acc_ref)

    acc_ref[...] += jnp.dot(adj_ref[...], h_ref[...],
                            preferred_element_type=jnp.float32)

    @pl.when(k == pl.num_programs(2) - 1)
    def _():
        o_ref[...] = (acc_ref[...] + b_ref[...]).astype(o_ref.dtype)


def graph_convolution(x, adj, weight, bias, *, tm=256, tk=512,
                      vmem_limit_bytes=64 * 1024 * 1024):
    """GCN layer: out = (adj @ x) @ W^T + b.

    x: (B, N, F_in), adj: (B, N, N), weight: (F_out, F_in), bias: (F_out,)
    Returns (B, N, F_out).
    """
    B, N, F_in = x.shape
    F_out = weight.shape[0]
    dtype = x.dtype

    # Lane-dense output: pad F_out up to a multiple of 128 (full unmasked vst),
    # folding the padding into the pre-transposed weight and the bias.
    F_out_p = _round_up(F_out, 128)
    wt = jnp.zeros((F_in, F_out_p), weight.dtype).at[:, :F_out].set(weight.T)
    b2 = jnp.zeros((1, F_out_p), bias.dtype).at[:, :F_out].set(bias)

    # Cheaper matmul association: apply the linear before aggregation when the
    # (padded) output width is smaller than F_in, so the dominant N^2
    # aggregation contracts over fewer features.
    pre_linear = F_out_p < F_in
    if pre_linear:
        h = jnp.einsum("bnf,fo->bno", x, wt,
                       preferred_element_type=jnp.float32).astype(dtype)
    else:
        h = x
    F_h = h.shape[-1]

    # Node tiling: TM rows of adj per step, TK along the aggregation
    # contraction.  Small graphs fall back to a single untiled block per batch.
    if N <= max(tm, tk):
        TM = TK = N
        N_p = N
    else:
        TM, TK = tm, tk
        N_p = _round_up(N, math.lcm(TM, TK))

    if N_p != N:
        # Zero padding is exact: padded adj columns / h rows contribute nothing.
        adj = jnp.zeros((B, N_p, N_p), adj.dtype).at[:, :N, :N].set(adj)
        h = jnp.zeros((B, N_p, F_h), h.dtype).at[:, :N, :].set(h)

    grid = (B, N_p // TM, N_p // TK)

    adj_spec = pl.BlockSpec((pl.Squeezed(), TM, TK), lambda b, i, k: (b, i, k))
    h_spec = pl.BlockSpec((pl.Squeezed(), TK, F_h), lambda b, i, k: (b, k, 0))
    wt_spec = pl.BlockSpec((F_in, F_out_p), lambda b, i, k: (0, 0))
    b_spec = pl.BlockSpec((1, F_out_p), lambda b, i, k: (0, 0))
    out_spec = pl.BlockSpec((pl.Squeezed(), TM, F_out_p), lambda b, i, k: (b, i, 0))

    if pre_linear:
        kernel = _agg_only_kernel
        in_specs = [adj_spec, h_spec, b_spec]
        operands = (adj, h, b2)
    else:
        kernel = _agg_then_linear_kernel
        in_specs = [adj_spec, h_spec, wt_spec, b_spec]
        operands = (adj, h, wt, b2)

    out = pl.pallas_call(
        kernel,
        out_shape=jax.ShapeDtypeStruct((B, N_p, F_out_p), dtype),
        grid_spec=pltpu.PrefetchScalarGridSpec(
            num_scalar_prefetch=0,
            grid=grid,
            in_specs=in_specs,
            out_specs=out_spec,
            scratch_shapes=[pltpu.VMEM((TM, F_h), jnp.float32)],
        ),
        compiler_params=pltpu.CompilerParams(
            dimension_semantics=("parallel", "parallel", "arbitrary"),
            vmem_limit_bytes=vmem_limit_bytes,
        ),
    )(*operands)

    return out[:, :N, :F_out]


if __name__ == "__main__":
    def reference(x, adj, weight, bias):
        return jnp.einsum("bij,bjf->bif", adj, x) @ weight.T + bias

    def make_inputs(key, B, N, F_in, F_out):
        kx, kadj, kw, kb = jax.random.split(key, 4)
        x = jax.random.normal(kx, (B, N, F_in), dtype=jnp.float32)
        adj = jax.random.uniform(kadj, (B, N, N), dtype=jnp.float32)
        # nn.Linear default init bound.
        bound = 1.0 / (F_in ** 0.5)
        w = jax.random.uniform(kw, (F_out, F_in), jnp.float32, -bound, bound)
        b = jax.random.uniform(kb, (F_out,), jnp.float32, -bound, bound)
        return x, adj, w, b

    k1, k2, k3 = jax.random.split(jax.random.PRNGKey(0), 3)

    # 1) Small graph, F_in <= F_out: aggregation + linear fused in one kernel.
    x, adj, w, b = make_inputs(k1, 2, 16, 32, 32)
    out = jax.block_until_ready(graph_convolution(x, adj, w, b))
    ref = reference(x, adj, w, b)
    assert out.shape == ref.shape
    assert jnp.allclose(out, ref, atol=1e-4, rtol=1e-4), "mismatch (case 1)"

    # 2) F_out << F_in: cheaper association (linear applied before aggregation).
    x, adj, w, b = make_inputs(k2, 2, 16, 256, 8)
    out = jax.block_until_ready(graph_convolution(x, adj, w, b))
    ref = reference(x, adj, w, b)
    assert jnp.allclose(out, ref, atol=1e-4, rtol=1e-4), "mismatch (case 2)"

    # 3) Force the row/K-tiled accumulation path at a still-small size.
    x, adj, w, b = make_inputs(k3, 2, 256, 32, 32)
    out = jax.block_until_ready(graph_convolution(x, adj, w, b, tm=128, tk=128))
    ref = reference(x, adj, w, b)
    assert jnp.allclose(out, ref, atol=1e-4, rtol=1e-4), "mismatch (case 3)"

    print("KERNEL_OK")
</pallas_src>

<mosaic_0001>
module attributes {stable_mosaic.version = 11 : i64} {
  func.func @_agg_then_linear_kernel(%arg0: i32, %arg1: i32, %arg2: i32, %arg3: memref<1x16x16xf32, #tpu.memory_space<vmem>>, %arg4: memref<1x16x32xf32, #tpu.memory_space<vmem>>, %arg5: memref<32x128xf32, #tpu.memory_space<vmem>>, %arg6: memref<1x128xf32, #tpu.memory_space<vmem>>, %arg7: memref<1x16x128xf32, #tpu.memory_space<vmem>>, %arg8: memref<16x32xf32, #tpu.memory_space<vmem>>) attributes {dimension_semantics = [#tpu.dimension_semantics<parallel>, #tpu.dimension_semantics<parallel>, #tpu.dimension_semantics<arbitrary>], iteration_bounds = array<i64: 2, 1, 1>, scalar_prefetch = 0 : i64, scratch_operands = 1 : i64, tpu.core_type = #tpu.core_type<tc>, window_params = [{transform_indices = @transform_0, window_bounds = array<i64: 1, 16, 16>}, {transform_indices = @transform_1, window_bounds = array<i64: 1, 16, 32>}, {pipeline_mode = #tpu.pipeline_mode<synchronous>, transform_indices = @transform_2, window_bounds = array<i64: 32, 128>}, {pipeline_mode = #tpu.pipeline_mode<synchronous>, transform_indices = @transform_3, window_bounds = array<i64: 1, 128>}, {transform_indices = @transform_4, window_bounds = array<i64: 1, 16, 128>}]} {
    %c0_i32 = arith.constant 0 : i32
    %0 = arith.cmpi eq, %arg2, %c0_i32 : i32
    %1 = arith.extui %0 : i1 to i32
    %c0_i32_0 = arith.constant 0 : i32
    %2 = arith.cmpi ne, %1, %c0_i32_0 : i32
    scf.if %2 {
      %cst_12 = arith.constant 0.000000e+00 : f32
      %14 = vector.broadcast %cst_12 : f32 to vector<16x32xf32>
      %c0_13 = arith.constant 0 : index
      %c0_14 = arith.constant 0 : index
      %15 = vector.load %arg8[%c0_13, %c0_14] : memref<16x32xf32, #tpu.memory_space<vmem>>, vector<16x32xf32>
      tpu.vector_store %arg8[%c0_13, %c0_14], %14 {strides = array<i32>} : memref<16x32xf32, #tpu.memory_space<vmem>>, vector<16x32xf32>,
    } else {
    }
    %c0 = arith.constant 0 : index
    %c0_1 = arith.constant 0 : index
    %3 = vector.load %arg8[%c0, %c0_1] : memref<16x32xf32, #tpu.memory_space<vmem>>, vector<16x32xf32>
    %c0_2 = arith.constant 0 : index
    %c0_3 = arith.constant 0 : index
    %c0_4 = arith.constant 0 : index
    %4 = vector.load %arg3[%c0_2, %c0_3, %c0_4] : memref<1x16x16xf32, #tpu.memory_space<vmem>>, vector<1x16x16xf32>
    %5 = vector.shape_cast %4 : vector<1x16x16xf32> to vector<16x16xf32>
    %c0_5 = arith.constant 0 : index
    %c0_6 = arith.constant 0 : index
    %c0_7 = arith.constant 0 : index
    %6 = vector.load %arg4[%c0_5, %c0_6, %c0_7] : memref<1x16x32xf32, #tpu.memory_space<vmem>>, vector<1x16x32xf32>
    %7 = vector.shape_cast %6 : vector<1x16x32xf32> to vector<16x32xf32>
    %cst = arith.constant dense<0.000000e+00> : vector<16x32xf32>
    %8 = tpu.matmul %5, %7, %cst {dimension_numbers = #tpu.dot_dimension_numbers<[1], [0], [0], [1], [0, 0, 1, 1], [], []>} : vector<16x16xf32>, vector<16x32xf32>, vector<16x32xf32> -> vector<16x32xf32>
    %9 = arith.addf %3, %8 : vector<16x32xf32>
    %c0_8 = arith.constant 0 : index
    %c0_9 = arith.constant 0 : index
    %10 = vector.load %arg8[%c0_8, %c0_9] : memref<16x32xf32, #tpu.memory_space<vmem>>, vector<16x32xf32>
    tpu.vector_store %arg8[%c0_8, %c0_9], %9 {strides = array<i32>} : memref<16x32xf32, #tpu.memory_space<vmem>>, vector<16x32xf32>,
    %c0_i32_10 = arith.constant 0 : i32
    %11 = arith.cmpi eq, %arg2, %c0_i32_10 : i32
    %12 = arith.extui %11 : i1 to i32
    %c0_i32_11 = arith.constant 0 : i32
    %13 = arith.cmpi ne, %12, %c0_i32_11 : i32
    scf.if %13 {
      %c0_12 = arith.constant 0 : index
      %c0_13 = arith.constant 0 : index
      %14 = vector.load %arg8[%c0_12, %c0_13] : memref<16x32xf32, #tpu.memory_space<vmem>>, vector<16x32xf32>
      %c0_14 = arith.constant 0 : index
      %c0_15 = arith.constant 0 : index
      %15 = vector.load %arg5[%c0_14, %c0_15] : memref<32x128xf32, #tpu.memory_space<vmem>>, vector<32x128xf32>
      %cst_16 = arith.constant dense<0.000000e+00> : vector<16x128xf32>
      %16 = tpu.matmul %14, %15, %cst_16 {dimension_numbers = #tpu.dot_dimension_numbers<[1], [0], [0], [1], [0, 0, 1, 1], [], []>} : vector<16x32xf32>, vector<32x128xf32>, vector<16x128xf32> -> vector<16x128xf32>
      %c0_17 = arith.constant 0 : index
      %c0_18 = arith.constant 0 : index
      %17 = vector.load %arg6[%c0_17, %c0_18] : memref<1x128xf32, #tpu.memory_space<vmem>>, vector<1x128xf32>
      %18 = vector.broadcast %17 : vector<1x128xf32> to vector<16x128xf32>
      %19 = arith.addf %16, %18 : vector<16x128xf32>
      %c0_19 = arith.constant 0 : index
      %c0_20 = arith.constant 0 : index
      %c0_21 = arith.constant 0 : index
      %20 = vector.load %arg7[%c0_19, %c0_20, %c0_21] : memref<1x16x128xf32, #tpu.memory_space<vmem>>, vector<1x16x128xf32>
      %21 = vector.shape_cast %20 : vector<1x16x128xf32> to vector<16x128xf32>
      %22 = vector.shape_cast %19 : vector<16x128xf32> to vector<1x16x128xf32>
      tpu.vector_store %arg7[%c0_19, %c0_20, %c0_21], %22 {strides = array<i32>} : memref<1x16x128xf32, #tpu.memory_space<vmem>>, vector<1x16x128xf32>,
    } else {
    }
    return
  }
  func.func @transform_0(%arg0: i32, %arg1: i32, %arg2: i32) -> (i32, i32, i32) {
    %c0_i32 = arith.constant 0 : i32
    return %arg0, %arg1, %arg2 : i32, i32, i32
  }
  func.func @transform_1(%arg0: i32, %arg1: i32, %arg2: i32) -> (i32, i32, i32) {
    %c0_i32 = arith.constant 0 : i32
    %c0_i32_0 = arith.constant 0 : i32
    return %arg0, %arg2, %c0_i32 : i32, i32, i32
  }
  func.func @transform_2(%arg0: i32, %arg1: i32, %arg2: i32) -> (i32, i32) {
    %c0_i32 = arith.constant 0 : i32
    %c0_i32_0 = arith.constant 0 : i32
    %c0_i32_1 = arith.constant 0 : i32
    return %c0_i32, %c0_i32_0 : i32, i32
  }
  func.func @transform_3(%arg0: i32, %arg1: i32, %arg2: i32) -> (i32, i32) {
    %c0_i32 = arith.constant 0 : i32
    %c0_i32_0 = arith.constant 0 : i32
    %c0_i32_1 = arith.constant 0 : i32
    return %c0_i32, %c0_i32_0 : i32, i32
  }
  func.func @transform_4(%arg0: i32, %arg1: i32, %arg2: i32) -> (i32, i32, i32) {
    %c0_i32 = arith.constant 0 : i32
    %c0_i32_0 = arith.constant 0 : i32
    return %arg0, %arg1, %c0_i32 : i32, i32, i32
  }
}

</mosaic_0001>

<bundles_post_ra>
// kernel: tpu_custom_call.1
= control target key start
LH: loop header
LB: loop body
LE: loop exit
PB: predicated region body
PF: predicated region fallthrough
CT: control target
= control target key end

     0   :  { %s1399_s0 = inlined_call_operand.hbm [shape: f32[2,16,16], index: 0, kind: input, shape index: {}]   ;;  %s1400_s1 = inlined_call_operand.hbm [shape: f32[2,16,32], index: 1, kind: input, shape index: {}]   ;;  %s1401_s2 = inlined_call_operand.hbm [shape: f32[32,128], index: 2, kind: input, shape index: {}]   ;;  %s1402_s3 = inlined_call_operand.hbm [shape: f32[1,128], index: 3, kind: input, shape index: {}]   ;;  %s1403_s4 = inlined_call_operand.hbm [shape: f32[2,16,128], index: 4, kind: output, shape index: {}]  }
   0x1   :  { %1413 = sst [smem:[#allocation19_spill]] %s1399_s0 }
   0x2   :  { %1414 = sst [smem:[#allocation20_spill]] %s1401_s2 }
   0x3   :  { %1415 = sst [smem:[#allocation21_spill]] %s1402_s3 }
   0x4   :  { %9 = vsyncpa [#allocation4], 0 }
   0x5   :  { %11 = vsyncpa [#allocation4 + $0x1], 0 }
   0x6   :  { %12 = vsyncpa [#allocation7], 0 }
   0x7   :  { %14 = vsyncpa [#allocation7 + $0x1], 0 }
   0x8   :  { %15 = vsyncpa [#allocation10], 0 }
   0x9   :  { %16 = vsyncpa [#allocation5], 0 }
   0xa   :  { %18 = vsyncpa [#allocation5 + $0x1], 0  ;;  %s1080_s15 = smov 0   ;;  %s1082_s16 = smov 0  }
   0xb   :  { %s1084_s17 = smov 0   ;;  %s1086_s18 = smov 0  }
   0xc   :  { %s1088_s19 = smov 0   ;;  %s1090_s20 = smov 0  }
   0xd LB: > { %1416 = sst [smem:[#allocation17_spill]] %s1039_s19  ;;  %s1111_s21 = sadd.s32 4294967295, %s1043_s20   ;;  %s1043_s20 = sphi %s1090_s20, %s24_s20   ;;  %s1039_s19 = sphi %s1088_s19, %s1439_s19   ;;  %s1035_s18 = sphi %s1086_s18, %s1438_s18   ;;  %s1031_s17 = sphi %s1084_s17, %s1442_s17   ;;  %s1027_s16 = sphi %s1082_s16, %s1441_s16   ;;  %s1023_s15 = sphi %s1080_s15, %s1440_s15  }
   0xe   : > { %s670_s22 = sadd.s32 4294967294, %s1043_s20   ;;  %p67_p0 = scmp.ne.s32.totalorder %s1027_s16, %s1023_s15 }
   0xf   : > { %p1404_p1 = scmp.eq.s32.totalorder %s1111_s21, 0  ;;  %p169_p3 = scmp.eq.s32.totalorder %s670_s22, 1 }
  0x10   : > { %p671_p5 = scmp.ge.s32.totalorder %s1043_s20, 1  ;;  %p176_p7 = scmp.lt.s32.totalorder %s1043_s20, 3 }
  0x11   : > { %p1120_p4 = por %p1404_p1, %p67_p0  ;;  %p1125_p6 = por %p169_p3, %p67_p0 }
  0x12   : > { %p1130_p8 = pnand %p671_p5, %p176_p7  ;;  %s1045_s26 = smov [#allocation8]  }
  0x13   : > { %s1417_s23 = scalar_select %p1120_p4, 1, 0 }
  0x14   : > { %s1418_s24 = scalar_select %p1125_p6, 1, 0 }
  0x15   : > { %s188_s27 = sshll.u32 %s1045_s26, 4  ;;  %p754_p9 = pneg %p1130_p8  ;;  %s1134_s27 = int_to_ptr.vmem [resolvable:$true] %s188_s27 }
  0x16   : > { %s1046_s29 = smov [#allocation9]   ;;  %s1421_s2 = sld [smem:[#allocation20_spill]] }
  0x17   : > { %p1141_p11 = pnand %p754_p9, %p1404_p1  ;;  %s202_s30 = sshll.u32 %s1046_s29, 4  ;;  %s1145_s30 = int_to_ptr.vmem [resolvable:$true] %s202_s30 }
  0x19   : > { %p835_p13 = pneg %p1141_p11 }
  0x1c   : > { %s833_s7 = scalar_lea.hbm %s1421_s2, 512 }
  0x1d   : > { %p834_p12 = scmp.ne.s32.totalorder %s1421_s2, %s833_s7  ;;  %p840_p5 = scmp.lt.u32.totalorder %s833_s7, %s1421_s2 }
  0x1f   : > { %p836_p0 = pnand %p835_p13, %p834_p12 }
  0x21   : > { %p837_p3 = pneg %p836_p0 }
  0x23   : > { %p842_p7 = pnand %p840_p5, %p837_p3 }
  0x25   : > { %845 = shalt.err (!%p842_p7)
}
  0x26   : > { %s846_s12 = scalar_lea.vmem %s1134_s27, 512  ;;  %p854_p2 = scmp.lt.s32.totalorder %s1134_s27, %s1134_s27 }
  0x27   : > { %p847_p9 = scmp.ne.s32.totalorder %s1134_s27, %s846_s12  ;;  %p855_p12 = scmp.lt.s32.totalorder %s846_s12, %s846_s12 }
  0x29   : > { %p849_p10 = pnand %p847_p9, %p835_p13  ;;  %p856_p0 = por %p855_p12, %p854_p2 }
  0x2b   : > { %p850_p1 = pneg %p849_p10 }
  0x2d   : > { %p857_p6 = pnand %p856_p0, %p850_p1 }
  0x2f   : > { %860 = shalt.err (!%p857_p6)
}
  0x30   : > { %s1405_s13 = smov 128   ;;  %s1407_s14 = smov 8  }
  0x31   : > { %757 = dma.hbm_to_vmem [thread:$0]  (!%p1141_p11), %s1421_s2, 512, %s1134_s27, [#allocation7], %s1405_s13, %s1405_s13, %s1407_s14  }
  0x32   : > { %s1422_s3 = sld [smem:[#allocation21_spill]] }
  0x38   : > { %s861_s6 = scalar_lea.hbm %s1422_s3, 16 }
  0x39   : > { %p862_p1 = scmp.ne.s32.totalorder %s1422_s3, %s861_s6  ;;  %p868_p10 = scmp.lt.u32.totalorder %s861_s6, %s1422_s3 }
  0x3b   : > { %p864_p2 = pnand %p862_p1, %p835_p13 }
  0x3d   : > { %p865_p6 = pneg %p864_p2 }
  0x3f   : > { %p870_p3 = pnand %p868_p10, %p865_p6 }
  0x41   : > { %873 = shalt.err (!%p870_p3)
}
  0x42   : > { %s874_s27 = scalar_lea.vmem %s1145_s30, 16  ;;  %s881_s11 = scalar_lea.vmem %s1145_s30, 32 }
  0x43   : > { %p875_p5 = scmp.ne.s32.totalorder %s1145_s30, %s874_s27  ;;  %p882_p12 = scmp.lt.s32.totalorder %s1145_s30, %s1145_s30 }
  0x44   : > { %p883_p0 = scmp.lt.s32.totalorder %s881_s11, %s874_s27 }
  0x45   : > { %p877_p7 = pnand %p875_p5, %p835_p13 }
  0x46   : > { %p884_p1 = por %p883_p0, %p882_p12 }
  0x47   : > { %p878_p9 = pneg %p877_p7 }
  0x49   : > { %p885_p2 = pnand %p884_p1, %p878_p9 }
  0x4b   : > { %888 = shalt.err (!%p885_p2)
}
  0x4c   : > { %760 = dma.hbm_to_vmem [thread:$0]  (!%p1141_p11), %s1422_s3, 16, %s1145_s30, [#allocation10]  }
  0x4d   : > { %s43_s26 = sadd.s32 1, %s1039_s19  ;;  %s54_s29 = sadd.s32 1, %s1031_s17 }
  0x4e   : > { %p45_p13 = scmp.ge.s32.totalorder %s43_s26, 2  ;;  %p61_p6 = scmp.ne.s32.totalorder %s1031_s17, %s1027_s16 }
  0x4f   : > { %p62_p10 = scmp.eq.s32.totalorder %s1043_s20, 0  ;;  %p774_p3 = scmp.lt.s32.totalorder %s1043_s20, 2 }
  0x50   : > { %s1444_s26 = smov (%p45_p13, %s43_s26), 0  ;;  %p1424_p7 = scmp.eq.s32.totalorder %s1111_s21, 1 }
  0x51   : > { %1423 = sst [smem:[#allocation18_spill]] %s1444_s26  ;;  %p63_p5 = por %p62_p10, %p61_p6 }
  0x52   : > { %p1213_p9 = por %p1424_p7, %p61_p6  ;;  %s47_s5 = ssub.s32 %s1039_s19, %s1444_s26 }
  0x53   : > { %s213_s6 = sand.u32 1, %s1031_s17   ;;  %p52_p12 = scmp.eq.s32.totalorder %s47_s5, 0 }
  0x54   : > { %s1425_s28 = scalar_select %p1213_p9, 1, 0 }
  0x55   : > { %s1220_s30 = sshll.u32 %s213_s6, 4  ;;  %s697_s7 = sshll.u32 %s1039_s19, 8 }
  0x56   : > { %s1224_s8 = scalar_select %p52_p12, %s1031_s17, %s54_s29  }
  0x57   : > { %s1426_s0 = sld [smem:[#allocation19_spill]]  ;;  %s217_s11 = scalar_lea.vmem [#allocation3], %s1220_s30 }
  0x58   : > { %s227_s12 = sshll.u32 %s217_s11, 4  ;;  %p1234_p11 = pnand %p774_p3, %p63_p5  ;;  %s1238_s12 = int_to_ptr.vmem [resolvable:$true] %s227_s12 }
  0x59   : > { %s1243_s9 = scalar_lea.hbm %s1400_s1, %s697_s7  ;;  %s1245_s10 = scalar_lea.sflag [#allocation4], %s213_s6 }
  0x5a   : > { %p891_p1 = pneg %p1234_p11 }
  0x5d   : > { %s1229_s27 = scalar_lea.hbm %s1426_s0, %s697_s7  ;;  %s894_s2 = scalar_lea.hbm %s1426_s0, 512 }
  0x5e   : > { %s889_s13 = scalar_lea.hbm %s1229_s27, 256  ;;  %p895_p6 = scmp.lt.u32.totalorder %s1229_s27, %s1426_s0 }
  0x5f   : > { %p890_p0 = scmp.ne.s32.totalorder %s1229_s27, %s889_s13  ;;  %p896_p10 = scmp.lt.u32.totalorder %s894_s2, %s889_s13 }
  0x60   : > { %p898_p5 = scmp.lt.u32.totalorder %s889_s13, %s1229_s27 }
  0x61   : > { %p892_p2 = pnand %p891_p1, %p890_p0  ;;  %p897_p3 = por %p896_p10, %p895_p6 }
  0x63   : > { %p893_p13 = pneg %p892_p2  ;;  %p899_p7 = por %p898_p5, %p897_p3 }
  0x65   : > { %p900_p12 = pnand %p899_p7, %p893_p13 }
  0x67   : > { %903 = shalt.err (!%p900_p12)
}
  0x68   : > { %s904_s6 = scalar_lea.vmem %s1238_s12, 256  ;;  %s1049_s14 = smov [#allocation3]  }
  0x69   : > { %p905_p0 = scmp.ne.s32.totalorder %s1238_s12, %s904_s6  ;;  %s909_s7 = sshll.u32 %s1049_s14, 4  ;;  %s910_s7 = int_to_ptr.vmem [resolvable:$false] %s909_s7 }
  0x6a   : > { %s911_s3 = scalar_lea.vmem %s910_s7, 512  ;;  %p912_p4 = scmp.lt.s32.totalorder %s1238_s12, %s910_s7 }
  0x6b   : > { %p907_p2 = pnand %p905_p0, %p891_p1  ;;  %p913_p6 = scmp.lt.s32.totalorder %s911_s3, %s904_s6 }
  0x6d   : > { %p908_p9 = pneg %p907_p2  ;;  %p914_p10 = por %p913_p6, %p912_p4 }
  0x6f   : > { %p915_p3 = pnand %p914_p10, %p908_p9 }
  0x71   : > { %918 = shalt.err (!%p915_p3)
}
  0x72   : > { %s1428_s2 = smov 8   ;;  %s1429_s13 = smov 128  }
  0x73   : > { %764 = dma.hbm_to_vmem [thread:$0]  (!%p1234_p11), %s1229_s27, 256, %s1238_s12, %s1245_s10, %s1429_s13, %s1429_s13, %s1428_s2  }
  0x74   : > { %s241_s26 = scalar_lea.vmem [#allocation6], %s1220_s30  ;;  %s237_s5 = sand.u32 1, %s1043_s20  }
  0x75   : > { %s250_s29 = sshll.u32 %s241_s26, 4  ;;  %s1280_s11 = scalar_lea.sflag [#allocation7], %s237_s5  ;;  %s1278_s29 = int_to_ptr.vmem [resolvable:$true] %s250_s29 }
  0x76   : > { %s919_s6 = scalar_lea.hbm %s1243_s9, 256  ;;  %s924_s3 = scalar_lea.hbm %s1400_s1, 512 }
  0x77   : > { %p920_p4 = scmp.ne.s32.totalorder %s1243_s9, %s919_s6  ;;  %p925_p5 = scmp.lt.u32.totalorder %s1243_s9, %s1400_s1 }
  0x78   : > { %p926_p7 = scmp.lt.u32.totalorder %s924_s3, %s919_s6  ;;  %p928_p0 = scmp.lt.u32.totalorder %s919_s6, %s1243_s9 }
  0x79   : > { %p922_p9 = pnand %p920_p4, %p891_p1 }
  0x7a   : > { %p927_p12 = por %p926_p7, %p925_p5 }
  0x7b   : > { %p923_p13 = pneg %p922_p9 }
  0x7c   : > { %p929_p2 = por %p928_p0, %p927_p12 }
  0x7e   : > { %p930_p6 = pnand %p929_p2, %p923_p13 }
  0x80   : > { %933 = shalt.err (!%p930_p6)
}
  0x81   : > { %s934_s30 = scalar_lea.vmem %s1278_s29, 256  ;;  %s1050_s27 = smov [#allocation6]  }
  0x82   : > { %p935_p10 = scmp.ne.s32.totalorder %s1278_s29, %s934_s30  ;;  %s939_s12 = sshll.u32 %s1050_s27, 4  ;;  %s940_s12 = int_to_ptr.vmem [resolvable:$false] %s939_s12 }
  0x83   : > { %s941_s0 = scalar_lea.vmem %s940_s12, 512  ;;  %p942_p9 = scmp.lt.s32.totalorder %s1278_s29, %s940_s12 }
  0x84   : > { %p937_p3 = pnand %p935_p10, %p891_p1  ;;  %p943_p5 = scmp.lt.s32.totalorder %s941_s0, %s934_s30 }
  0x86   : > { %p938_p4 = pneg %p937_p3  ;;  %p944_p7 = por %p943_p5, %p942_p9 }
  0x88   : > { %p945_p12 = pnand %p944_p7, %p938_p4 }
  0x8a   : > { %948 = shalt.err (!%p945_p12)
}
  0x8b   : > { %767 = dma.hbm_to_vmem [thread:$0]  (!%p1234_p11), %s1243_s9, 256, %s1278_s29, %s1280_s11, %s1429_s13, %s1429_s13, %s1428_s2  }
  0x8c   : > { %262 = sbr.rel (%p1130_p8) target bundleno = 618 (0x26a), region = 36  ;;  %s1312_s19 = sand.u32 (!%p1130_p8), 1, %s1027_s16  }
  0x8d   : > { %s1315_s10 = sshll.u32 (!%p1130_p8), %s1312_s19, 4  ;;  %s265_s22 = scalar_lea.sflag (!%p1130_p8), [#allocation4], %s1312_s19 }
  0x8e   : > { %s268_s26 = scalar_lea.vmem (!%p1130_p8), [#allocation3], %s1315_s10  ;;  %p1430_p1 = scmp.ne.s32.totalorder (!%p1130_p8), %s1417_s23, 0 }
  0x93   : > { %1002 = dma.done.wait (%p1430_p1), %s265_s22, 256  }
  0x94   : > { %1004 = vsyncadd (%p1430_p1), %s265_s22, 4294967040  ;;  %s273_s25 = sand.u32 1, %s1111_s21   ;;  %s277_s2 = scalar_lea.vmem [#allocation6], %s1315_s10 }
  0x95   : > { %s274_s9 = scalar_lea.sflag [#allocation7], %s273_s25 }
  0x96   : > { %1006 = dma.done.wait (%p1430_p1), %s274_s9, 256  }
  0x97   : > { %1008 = vsyncadd (%p1430_p1), %s274_s9, 4294967040  ;;  %p1431_p8 = scmp.eq.s32.totalorder %s1111_s21, 0 }
  0x99   : > { %1010 = dma.done.wait (%p1431_p8), [#allocation7], 512   ;;  %p1432_p11 = pmov %p1431_p8 }
  0x9a   : > { %p1433_p13 = pmov %p1431_p8 }
  0x9b   : > { %1012 = vsyncadd (%p1432_p11), [#allocation7], 4294966784 }
  0x9c   : > { %1014 = dma.done.wait (%p1433_p13), [#allocation10], 16   ;;  %p1434_p0 = pmov %p1431_p8 }
  0x9d   : > { %vm322_vm0 = vcmask 261120   ;;  %v1051_v0 = vmov 0.0   ;;  %vm331_vm1 = vcmask 130048   ;;  %v329_v1 = vld [vmem:[%s277_s2] sm:$0xff]  ;;  %v330_v2 = vld [vmem:[%s277_s2 + $0x8] sm:$0xff]  ;;  %s314_s21 = scalar_lea.vmem [#allocation11], %s1315_s10 }
  0x9e   : > { %1016 = vsyncadd (%p1434_p0), [#allocation10], 4294967280  ;;  %324 = vst.msk [vmem:[#allocation2 + $0x8] sm:$0xff] %vm322_vm0, %v1051_v0  ;;  %v327_v3 = vld [vmem:[%s268_s26] sm:$0xff]  ;;  %v728_v4 = vpack.c.bf16 %v330_v2, %v329_v1  ;;  %v328_v5 = vld [vmem:[%s268_s26 + $0x8] sm:$0xff]  ;;  %s533_s23 = sshll.u32 %s314_s21, 4  ;;  %s1345_s23 = int_to_ptr.vmem [resolvable:$true] %s533_s23 }
  0x9f   : > { %323 = vst.msk [vmem:[#allocation2] sm:$0xff] %vm322_vm0, %v1051_v0  ;;  %714 = vmatprep.mubr.msk.f32.mxu0 %vm331_vm1, %v327_v3  ;;  %v423_v6 = vld [vmem:[#allocation8] sm:$0xff]  ;;  %v424_v7 = vld [vmem:[#allocation8 + $0x8] sm:$0xff]  ;;  %v425_v9 = vld [vmem:[#allocation8 + $0x10] sm:$0xff]  ;;  %s699_s13 = sshll.u32 %s1035_s18, 8  ;;  %s518_s6 = scalar_lea.sflag [#allocation5], %s1312_s19 }
  0xa0   : > { %729 = vmatprep.subr.bf16.mxu0 %v728_v4  ;;  %v732_v8 = vpack.c.bf16 %v424_v7, %v423_v6  ;;  %v426_v10 = vld [vmem:[#allocation8 + $0x18] sm:$0xff]  ;;  %v689_v20 = vld [vmem:[#allocation9] ss:$0 sm:$0xff]  ;;  %s1350_s11 = scalar_lea.hbm %s1403_s4, %s699_s13  ;;  %s949_s14 = scalar_lea.vmem %s1345_s23, 256 }
  0xa1   : > { %731 = vmatpush3.bf16.msra.mxu0 %v728_v4  ;;  %v736_v11 = vpack.c.bf16 %v426_v10, %v425_v9  ;;  %p950_p2 = scmp.ne.s32.totalorder %s1345_s23, %s949_s14  ;;  %p1435_p6 = scmp.ne.s32.totalorder %s1425_s28, 0 }
  0xa2   : > { %733 = vmatprep.subr.bf16.mxu1 %v732_v8  ;;  %s1052_s18 = smov [#allocation11]  }
  0xa3   : > { %735 = vmatpush3.bf16.msra.mxu1 %v732_v8  ;;  %p951_p10 = pnand %p950_p2, %p1435_p6  ;;  %s953_s7 = sshll.u32 %s1052_s18, 4  ;;  %s954_s7 = int_to_ptr.vmem [resolvable:$false] %s953_s7 }
  0xa4   : > { %715 = vmatmul.mubr.msk.f32.vlgmr.msra.gmra.mrb[0].mxu0 %vm331_vm1, %v328_v5  ;;  %737 = vmatprep.subr.bf16.mxu1 %v736_v11  ;;  %s955_s3 = scalar_lea.vmem %s954_s7, 512  ;;  %p956_p4 = scmp.lt.s32.totalorder %s1345_s23, %s954_s7 }
  0xa5   : > { %v326_v12 = vld [vmem:[#allocation2 + $0x8] sm:$0xff]  ;;  %p952_p3 = pneg %p951_p10  ;;  %p957_p9 = scmp.lt.s32.totalorder %s955_s3, %s949_s14 }
  0xa6   : > { %v325_v13 = vld [vmem:[#allocation2] sm:$0xff] }
  0xa7   : > { %739 = vmatpush3.bf16.msra.mxu1 %v736_v11  ;;  %p958_p5 = por %p957_p9, %p956_p4 }
  0xa9   : > { %p959_p7 = pnand %p958_p5, %p952_p3 }
 0x177   : > { %v716_v14 = vpop.f32.mrb[0].mxu0 }
 0x178   : > { %v414_v15 = vadd.f32 %v716_v14, %v326_v12  ;;  %v404_v16 = vpop.f32.mrb[1].mxu0 }
 0x179   : > { %v413_v17 = vadd.f32 %v404_v16, %v325_v13 }
 0x17a   : > { %417 = vst.msk [vmem:[#allocation2 + $0x8] sm:$0xff] %vm322_vm0, %v414_v15 }
 0x17b   : > { %416 = vst.msk [vmem:[#allocation2] sm:$0xff] %vm322_vm0, %v413_v17 }
 0x181   : > { %v422_v19 = vld [vmem:[#allocation2 + $0x8] sm:$0xff] }
 0x182   : > { %v421_v18 = vld [vmem:[#allocation2] sm:$0xff] }
 0x183   : > { %725 = vmatprep.mubr.msk.f32.mxu1 %vm322_vm0, %v421_v18 }
 0x184   : > { %726 = vmatmul.mubr.msk.f32.vlgmr.msra.gmra.mrb[0].mxu1 %vm322_vm0, %v422_v19 }
 0x257   : > { %v727_v21 = vpop.f32.mrb[0].mxu1 }
 0x258   : > { %v512_v22 = vadd.f32 %v727_v21, %v689_v20  ;;  %v506_v23 = vpop.f32.mrb[1].mxu1 }
 0x259   : > { %v507_v24 = vadd.f32 %v689_v20, %v506_v23 }
 0x25a   : > { %516 = vst [vmem:[%s314_s21 + $0x8] sm:$0xff] %v512_v22 }
 0x25b   : > { %515 = vst [vmem:[%s314_s21] sm:$0xff] %v507_v24 }
 0x25c   : > { %962 = shalt.err (!%p959_p7)
}
 0x25d   : > { %s963_s30 = scalar_lea.hbm %s1350_s11, 256  ;;  %s967_s0 = scalar_lea.hbm %s1403_s4, 512 }
 0x25e   : > { %p964_p12 = scmp.ne.s32.totalorder %s1350_s11, %s963_s30  ;;  %p968_p11 = scmp.lt.u32.totalorder %s1350_s11, %s1403_s4 }
 0x25f   : > { %p969_p13 = scmp.lt.u32.totalorder %s967_s0, %s963_s30  ;;  %p971_p2 = scmp.lt.u32.totalorder %s963_s30, %s1350_s11 }
 0x260   : > { %p965_p1 = pnand %p964_p12, %p1435_p6 }
 0x261   : > { %p970_p0 = por %p969_p13, %p968_p11 }
 0x262   : > { %p966_p8 = pneg %p965_p1 }
 0x263   : > { %p972_p10 = por %p971_p2, %p970_p0 }
 0x265   : > { %p973_p3 = pnand %p972_p10, %p966_p8 }
 0x267   : > { %976 = shalt.err (!%p973_p3)
}
 0x268   : > { %s1053_s26 = smov 128   ;;  %s1054_s25 = smov 8  }
 0x269   : > { %752 = dma.vmem_to_hbm [thread:$0]  (%p1435_p6), %s1345_s23, 256, %s1350_s11, %s518_s6, %s1053_s26, %s1053_s26, %s1054_s25  }
 0x26a PF: > { %s548_s9 = sand.u32 1, %s1023_s15   ;;  %p1436_p4 = scmp.ne.s32.totalorder %s1418_s24, 0 }
 0x26b   : > { %p1437_p9 = scmp.ge.s32.totalorder %s1043_s20, 2  ;;  %s549_s2 = scalar_lea.sflag [#allocation5], %s548_s9 }
 0x26d   : > { %p769_p5 = pnand %p1437_p9, %p1436_p4 }
 0x26f   : > { %1018 = dma.done.wait (!%p769_p5), %s549_s2, 256  }
 0x270   : > { %1020 = vsyncadd (!%p769_p5), %s549_s2, 4294967040  ;;  %s24_s20 = sadd.s32 1, %s1043_s20   ;;  %s1438_s18 = sld [smem:[#allocation17_spill]] }
 0x271   : > { %p21_p7 = scmp.ge.s32.totalorder %s24_s20, 4   ;;  %s1439_s19 = sld [smem:[#allocation18_spill]] }
 0x272   : > { %s1440_s15 = smov %s1027_s16  ;;  %s1441_s16 = smov %s1031_s17 }
 0x273   : > { %s1442_s17 = smov %s1224_s8  ;;  %23 = sbr.rel (!%p21_p7) target bundleno = 13 (0xd), region = 110 }
 0x27a   :  { %554 = vsyncpa [#allocation4], 1 }
 0x27b   :  { %556 = vsyncpa [#allocation4 + $0x1], 1 }
 0x27c   :  { %557 = vsyncpa [#allocation7], 1 }
 0x27d   :  { %559 = vsyncpa [#allocation7 + $0x1], 1 }
 0x27e   :  { %560 = vsyncpa [#allocation10], 1 }
 0x27f   :  { %561 = vsyncpa [#allocation5], 1 }
 0x280   :  { %563 = vsyncpa [#allocation5 + $0x1], 1 }

</bundles_post_ra>
